<compile_context>
chip_gen: v7x
topology: tpu7x:2x2x1
jax: 0.10.0
libtpu: 0.0.40
codegen_flags: <defaults>
</compile_context>

<pallas_src>
import functools

import jax
import jax.numpy as jnp
from jax.experimental import pallas as pl
from jax.experimental.pallas import tpu as pltpu


def _round_up(n, m):
    return ((n + m - 1) // m) * m


def _mlp2_kernel(x_ref, w1_ref, b1_ref, w2_ref, b2_ref, o_ref):
    # fc1 on the MXU, f32 accumulate; bias + ReLU on the VPU in f32.
    h = jnp.dot(x_ref[...], w1_ref[...], preferred_element_type=jnp.float32)
    h = jnp.maximum(h + b1_ref[...], 0.0)                      # (tm, 256)

    # fc2 has N == 1: a (tm,256)@(256,1) matmul wastes the MXU, so do a VPU
    # multiply + cross-lane (XLU) reduction against the (1, 256) weight row.
    w2_row = w2_ref[...].astype(jnp.float32)                   # (1, 256)
    y = jnp.sum(h * w2_row, axis=-1, keepdims=True)            # (tm, 1)
    y = y + b2_ref[...]                                        # scalar bias
    o_ref[...] = jax.nn.sigmoid(y).astype(o_ref.dtype)


@functools.partial(jax.jit, static_argnames=("tm", "use_bf16"))
def mlp2_forward(x, w1, b1, w2, b2, *, tm=512, use_bf16=False):
    """x: (B, in_dim) f32. w1: (in_dim, 256), b1: (256,) or (1,256),
    w2: (256, 1), b2: (1,) or (1,1). Returns (B, 1) f32."""
    B, in_dim = x.shape
    hidden = w1.shape[1]

    # ---- choose the effective batch tile -------------------------------
    tm_eff = min(tm, _round_up(B, 8))          # never bigger than the batch
    half = _round_up(B, 8) // 2
    if half >= 128:                            # keep >=2 grid steps when the
        tm_eff = min(tm_eff, _round_up(half, 8))  # batch is big (v7x megacore)
    B_pad = _round_up(B, tm_eff)
    if B_pad != B:
        x = jnp.pad(x, ((0, B_pad - B), (0, 0)))
    grid = (B_pad // tm_eff,)

    # ---- parameter layout for the kernel -------------------------------
    b1_row = b1.reshape(1, hidden).astype(jnp.float32)
    w2_row = w2.reshape(1, hidden).astype(jnp.float32)   # (256,1) -> (1,256)
    b2_sc = b2.reshape(1, 1).astype(jnp.float32)

    if use_bf16:
        # bf16 into the MXU, f32 accumulate + f32 epilogue (safe on v5e too).
        x = x.astype(jnp.bfloat16)
        w1 = w1.astype(jnp.bfloat16)

    # ---- VMEM budget -> scoped limit ------------------------------------
    xb = x.dtype.itemsize
    wb = w1.dtype.itemsize
    vmem_needed = (
        2 * tm_eff * in_dim * xb            # double-buffered x tile
        + in_dim * hidden * wb              # resident w1
        + tm_eff * hidden * 4               # live f32 hidden activations
        + 2 * tm_eff * 4                    # double-buffered output tile
        + 4 * hidden * 4                    # b1 row, w2 row (buffered)
        + (2 << 20)                         # slack
    )
    vmem_limit = int(min(48 * 1024 * 1024, max(vmem_needed, 32 * 1024 * 1024)))
    # TODO(synk): for very large in_dim on v7x (64 MiB VMEM), tile the K axis
    # of w1 with an "arbitrary" grid dim + f32 accumulator instead of keeping
    # w1 fully resident.

    out = pl.pallas_call(
        _mlp2_kernel,
        out_shape=jax.ShapeDtypeStruct((B_pad, 1), jnp.float32),
        grid_spec=pltpu.PrefetchScalarGridSpec(
            num_scalar_prefetch=0,
            grid=grid,
            in_specs=[
                # x: tile over batch, full in_dim
                pl.BlockSpec((tm_eff, in_dim), lambda i: (i, 0)),
                # params: full arrays, same block every grid step (resident)
                pl.BlockSpec((in_dim, hidden), lambda i: (0, 0)),
                pl.BlockSpec((1, hidden), lambda i: (0, 0)),
                pl.BlockSpec((1, hidden), lambda i: (0, 0)),
                pl.BlockSpec((1, 1), lambda i: (0, 0)),
            ],
            out_specs=pl.BlockSpec((tm_eff, 1), lambda i: (i, 0)),
        ),
        compiler_params=pltpu.CompilerParams(
            dimension_semantics=("parallel",),
            vmem_limit_bytes=vmem_limit,
        ),
    )(x, w1, b1_row, w2_row, b2_sc)

    return out[:B]


def init_params(key, in_dim, hidden=256, out_dim=1):
    """Deterministic PyTorch-Linear-style (uniform +/- 1/sqrt(fan_in)) init."""
    k1, k2, k3, k4 = jax.random.split(key, 4)
    bound1 = 1.0 / jnp.sqrt(in_dim)
    bound2 = 1.0 / jnp.sqrt(hidden)
    # Stored transposed relative to PyTorch: (in, out) instead of (out, in).
    w1 = jax.random.uniform(k1, (in_dim, hidden), jnp.float32, -bound1, bound1)
    b1 = jax.random.uniform(k2, (1, hidden), jnp.float32, -bound1, bound1)
    w2 = jax.random.uniform(k3, (hidden, out_dim), jnp.float32, -bound2, bound2)
    b2 = jax.random.uniform(k4, (1, out_dim), jnp.float32, -bound2, bound2)
    return w1, b1, w2, b2


def reference_forward(x, w1, b1, w2, b2):
    h = jnp.maximum(x @ w1 + b1, 0.0)
    return jax.nn.sigmoid(h @ w2 + b2)


if __name__ == "__main__":
    key = jax.random.PRNGKey(0)
    kx, kx2, kp = jax.random.split(key, 3)

    in_dim = 32
    w1, b1, w2, b2 = init_params(kp, in_dim)

    # Small batch (single tile).
    B = 8
    x = jax.random.normal(kx, (B, in_dim), jnp.float32)
    out = jax.block_until_ready(mlp2_forward(x, w1, b1, w2, b2))
    ref = reference_forward(x, w1, b1, w2, b2)
    assert out.shape == (B, 1)
    assert jnp.allclose(out, ref, atol=1e-5, rtol=1e-5), "mismatch vs reference (B=8)"

    # Batch that is NOT a multiple of the tile -> exercises the pad/slice path.
    B2 = 10
    x2 = jax.random.normal(kx2, (B2, in_dim), jnp.float32)
    out2 = jax.block_until_ready(mlp2_forward(x2, w1, b1, w2, b2))
    ref2 = reference_forward(x2, w1, b1, w2, b2)
    assert out2.shape == (B2, 1)
    assert jnp.allclose(out2, ref2, atol=1e-5, rtol=1e-5), "mismatch vs reference (B=10)"

    print("KERNEL_OK")
</pallas_src>

<mosaic_0001>
module attributes {stable_mosaic.version = 11 : i64} {
  func.func @_mlp2_kernel(%arg0: i32, %arg1: memref<8x32xf32, #tpu.memory_space<vmem>>, %arg2: memref<32x256xf32, #tpu.memory_space<vmem>>, %arg3: memref<1x256xf32, #tpu.memory_space<vmem>>, %arg4: memref<1x256xf32, #tpu.memory_space<vmem>>, %arg5: memref<1x1xf32, #tpu.memory_space<vmem>>, %arg6: memref<8x1xf32, #tpu.memory_space<vmem>>) attributes {dimension_semantics = [#tpu.dimension_semantics<parallel>], iteration_bounds = array<i64: 1>, scalar_prefetch = 0 : i64, scratch_operands = 0 : i64, tpu.core_type = #tpu.core_type<tc>, window_params = [{transform_indices = @transform_0, window_bounds = array<i64: 8, 32>}, {pipeline_mode = #tpu.pipeline_mode<synchronous>, transform_indices = @transform_1, window_bounds = array<i64: 32, 256>}, {pipeline_mode = #tpu.pipeline_mode<synchronous>, transform_indices = @transform_2, window_bounds = array<i64: 1, 256>}, {pipeline_mode = #tpu.pipeline_mode<synchronous>, transform_indices = @transform_3, window_bounds = array<i64: 1, 256>}, {pipeline_mode = #tpu.pipeline_mode<synchronous>, transform_indices = @transform_4, window_bounds = array<i64: 1, 1>}, {transform_indices = @transform_5, window_bounds = array<i64: 8, 1>}]} {
    %c0 = arith.constant 0 : index
    %c0_0 = arith.constant 0 : index
    %0 = vector.load %arg1[%c0, %c0_0] : memref<8x32xf32, #tpu.memory_space<vmem>>, vector<8x32xf32>
    %c0_1 = arith.constant 0 : index
    %c0_2 = arith.constant 0 : index
    %1 = vector.load %arg2[%c0_1, %c0_2] : memref<32x256xf32, #tpu.memory_space<vmem>>, vector<32x256xf32>
    %cst = arith.constant dense<0.000000e+00> : vector<8x256xf32>
    %2 = tpu.matmul %0, %1, %cst {dimension_numbers = #tpu.dot_dimension_numbers<[1], [0], [0], [1], [0, 0, 1, 1], [], []>} : vector<8x32xf32>, vector<32x256xf32>, vector<8x256xf32> -> vector<8x256xf32>
    %c0_3 = arith.constant 0 : index
    %c0_4 = arith.constant 0 : index
    %3 = vector.load %arg3[%c0_3, %c0_4] : memref<1x256xf32, #tpu.memory_space<vmem>>, vector<1x256xf32>
    %4 = vector.broadcast %3 : vector<1x256xf32> to vector<8x256xf32>
    %5 = arith.addf %2, %4 : vector<8x256xf32>
    %cst_5 = arith.constant 0.000000e+00 : f32
    %6 = vector.broadcast %cst_5 : f32 to vector<8x256xf32>
    %7 = arith.maximumf %5, %6 : vector<8x256xf32>
    %c0_6 = arith.constant 0 : index
    %c0_7 = arith.constant 0 : index
    %8 = vector.load %arg4[%c0_6, %c0_7] : memref<1x256xf32, #tpu.memory_space<vmem>>, vector<1x256xf32>
    %9 = vector.broadcast %8 : vector<1x256xf32> to vector<8x256xf32>
    %10 = arith.mulf %7, %9 : vector<8x256xf32>
    %cst_8 = arith.constant dense<0.000000e+00> : vector<8xf32>
    %11 = vector.multi_reduction <add>, %10, %cst_8 [1] : vector<8x256xf32> to vector<8xf32>
    %12 = vector.shape_cast %11 : vector<8xf32> to vector<8x1xf32>
    %c0_9 = arith.constant 0 : index
    %c0_10 = arith.constant 0 : index
    %13 = vector.load %arg5[%c0_9, %c0_10] : memref<1x1xf32, #tpu.memory_space<vmem>>, vector<1x1xf32>
    %14 = vector.broadcast %13 : vector<1x1xf32> to vector<8x1xf32>
    %15 = arith.addf %12, %14 : vector<8x1xf32>
    %16 = arith.negf %15 : vector<8x1xf32>
    %17 = math.exp %16 : vector<8x1xf32>
    %cst_11 = arith.constant 1.000000e+00 : f32
    %18 = vector.broadcast %cst_11 : f32 to vector<8x1xf32>
    %19 = arith.addf %18, %17 : vector<8x1xf32>
    %20 = arith.divf %18, %19 : vector<8x1xf32>
    %c0_12 = arith.constant 0 : index
    %c0_13 = arith.constant 0 : index
    %21 = vector.load %arg6[%c0_12, %c0_13] : memref<8x1xf32, #tpu.memory_space<vmem>>, vector<8x1xf32>
    tpu.vector_store %arg6[%c0_12, %c0_13], %20 {strides = array<i32>} : memref<8x1xf32, #tpu.memory_space<vmem>>, vector<8x1xf32>,
    return
  }
  func.func @transform_0(%arg0: i32) -> (i32, i32) {
    %c0_i32 = arith.constant 0 : i32
    %c0_i32_0 = arith.constant 0 : i32
    return %arg0, %c0_i32 : i32, i32
  }
  func.func @transform_1(%arg0: i32) -> (i32, i32) {
    %c0_i32 = arith.constant 0 : i32
    %c0_i32_0 = arith.constant 0 : i32
    %c0_i32_1 = arith.constant 0 : i32
    return %c0_i32, %c0_i32_0 : i32, i32
  }
  func.func @transform_2(%arg0: i32) -> (i32, i32) {
    %c0_i32 = arith.constant 0 : i32
    %c0_i32_0 = arith.constant 0 : i32
    %c0_i32_1 = arith.constant 0 : i32
    return %c0_i32, %c0_i32_0 : i32, i32
  }
  func.func @transform_3(%arg0: i32) -> (i32, i32) {
    %c0_i32 = arith.constant 0 : i32
    %c0_i32_0 = arith.constant 0 : i32
    %c0_i32_1 = arith.constant 0 : i32
    return %c0_i32, %c0_i32_0 : i32, i32
  }
  func.func @transform_4(%arg0: i32) -> (i32, i32) {
    %c0_i32 = arith.constant 0 : i32
    %c0_i32_0 = arith.constant 0 : i32
    %c0_i32_1 = arith.constant 0 : i32
    return %c0_i32, %c0_i32_0 : i32, i32
  }
  func.func @transform_5(%arg0: i32) -> (i32, i32) {
    %c0_i32 = arith.constant 0 : i32
    %c0_i32_0 = arith.constant 0 : i32
    return %arg0, %c0_i32 : i32, i32
  }
}

</mosaic_0001>

<bundles_post_ra>
// kernel: mlp2_forward.1
= control target key start
LH: loop header
LB: loop body
LE: loop exit
PB: predicated region body
PF: predicated region fallthrough
CT: control target
= control target key end

     0   :  { %s331_s0 = inlined_call_operand.hbm [shape: f32[8,32], index: 0, kind: input, shape index: {}]   ;;  %s332_s1 = inlined_call_operand.hbm [shape: f32[32,256], index: 1, kind: input, shape index: {}]   ;;  %s333_s2 = inlined_call_operand.vmem [shape: f32[1,256], index: 2, kind: input, shape index: {}]   ;;  %s334_s3 = inlined_call_operand.vmem [shape: f32[1,256], index: 3, kind: input, shape index: {}]   ;;  %s335_s4 = inlined_call_operand.<no memory space> [shape: f32[1,1], index: 4, kind: input, shape index: {}]   ;;  %s336_s5 = inlined_call_operand.vmem [shape: f32[8,1], index: 5, kind: output, shape index: {}]  }
   0x1   :  { %v10_v0 = vstv %s335_s4 }
   0x2   :  { %11 = vst [vmem:[#allocation2] sm:$0x1] %v10_v0 }
   0x3   :  { %12 = vsyncpa [#allocation4], 0 }
   0x4   :  { %13 = vsyncpa [#allocation6], 0  ;;  %s253_s20 = smov [#allocation3]   ;;  %s254_s22 = smov [#allocation5]  }
   0x5   :  { %s20_s21 = sshll.u32 %s253_s20, 4  ;;  %s29_s23 = sshll.u32 %s254_s22, 4  ;;  %s21_s21 = int_to_ptr.vmem [resolvable:$true] %s20_s21  ;;  %s291_s23 = int_to_ptr.vmem [resolvable:$true] %s29_s23 }
   0x6   :  { %s205_s26 = scalar_lea.hbm %s331_s0, 128 }
   0x7   :  { %p206_p0 = scmp.ne.s32.totalorder %s331_s0, %s205_s26  ;;  %p209_p1 = scmp.lt.u32.totalorder %s205_s26, %s331_s0 }
   0x9   :  { %p211_p2 = pnand %p209_p1, %p206_p0 }
   0xb   :  { %214 = shalt.err (!%p211_p2)
}
   0xc   :  { %s215_s30 = scalar_lea.vmem %s21_s21, 128  ;;  %p220_p4 = scmp.lt.s32.totalorder %s21_s21, %s21_s21 }
   0xd   :  { %p216_p3 = scmp.ne.s32.totalorder %s21_s21, %s215_s30  ;;  %p221_p5 = scmp.lt.s32.totalorder %s215_s30, %s215_s30 }
   0xf   :  { %p222_p6 = por %p221_p5, %p220_p4 }
  0x11   :  { %p223_p7 = pnand %p222_p6, %p216_p3 }
  0x13   :  { %226 = shalt.err (!%p223_p7)
}
  0x14   :  { %23 = dma.hbm_to_vmem [thread:$0]  %s331_s0, 128, %s21_s21, [#allocation4]  }
  0x15   :  { %s227_s10 = scalar_lea.hbm %s332_s1, 1024 }
  0x16   :  { %p228_p8 = scmp.ne.s32.totalorder %s332_s1, %s227_s10  ;;  %p231_p9 = scmp.lt.u32.totalorder %s227_s10, %s332_s1 }
  0x18   :  { %p233_p10 = pnand %p231_p9, %p228_p8 }
  0x1a   :  { %236 = shalt.err (!%p233_p10)
}
  0x1b   :  { %s237_s15 = scalar_lea.vmem %s291_s23, 1024  ;;  %p242_p12 = scmp.lt.s32.totalorder %s291_s23, %s291_s23 }
  0x1c   :  { %p238_p11 = scmp.ne.s32.totalorder %s291_s23, %s237_s15  ;;  %p243_p13 = scmp.lt.s32.totalorder %s237_s15, %s237_s15 }
  0x1e   :  { %p244_p0 = por %p243_p13, %p242_p12 }
  0x20   :  { %p245_p1 = pnand %p244_p0, %p238_p11 }
  0x22   :  { %248 = shalt.err (!%p245_p1)
}
  0x23   :  { %s255_s0 = smov 256   ;;  %s256_s16 = smov 16  }
  0x24   :  { %35 = dma.hbm_to_vmem [thread:$0]  %s332_s1, 1024, %s291_s23, [#allocation6], %s255_s0, %s255_s0, %s256_s16  }
  0x25   :  { %249 = dma.done.wait [#allocation4], 128  }
  0x26   :  { %250 = vsyncadd [#allocation4], 4294967168 }
  0x27   :  { %251 = dma.done.wait [#allocation6], 1024  }
  0x28   :  { %252 = vsyncadd [#allocation6], 4294966272  ;;  %v257_v1 = vmov 0.0   ;;  %v50_v2 = vld [vmem:[#allocation5 + $0x8] sm:$0xff]  ;;  %v52_v3 = vld [vmem:[#allocation5 + $0x18] sm:$0xff]  ;;  %vm69_vm0 = vcmask 261120   ;;  %v59_v15 = vlaneseq }
  0x29   :  { %137 = vmatprep.mubr.f32.mxu0 %v257_v1  ;;  %v49_v4 = vld [vmem:[#allocation5] sm:$0xff]  ;;  %v188_v5 = vpack.c.bf16 %v52_v3, %v50_v2  ;;  %v51_v6 = vld [vmem:[#allocation5 + $0x10] sm:$0xff]  ;;  %v54_v7 = vld [vmem:[#allocation5 + $0x28] sm:$0xff]  ;;  %vm177_vm1 = vcmask 7168  }
  0x2a   :  { %v56_v8 = vld [vmem:[#allocation5 + $0x38] sm:$0xff]  ;;  %v190_v9 = vpack.c.bf16 %v51_v6, %v49_v4  ;;  %v53_v11 = vld [vmem:[#allocation5 + $0x20] sm:$0xff]  ;;  %v55_v12 = vld [vmem:[#allocation5 + $0x30] sm:$0xff]  ;;  %v60_v16 = vshrl.u32 %v59_v15, 7 }
  0x2b   :  { %v192_v10 = vpack.c.bf16 %v56_v8, %v54_v7  ;;  %189 = vmatprep.subr.bf16.mxu0 %v188_v5  ;;  %v194_v13 = vpack.c.bf16 %v55_v12, %v53_v11  ;;  %v48_v14 = vld [vmem:[#allocation3] sm:$0xff]  ;;  %v186_v34 = vld [vmem:[#allocation2] ss:$0 sm:$0xff] }
  0x2c   :  { %191 = vmatpush1.bf16.msra.mxu0 %v190_v9  ;;  %v61_v17 = vsub.s32 0, %v60_v16  ;;  %v57_v18 = vld [vmem:[%s333_s2] sm:$0x3]  ;;  %v65_v19 = vsub.s32 1, %v60_v16 }
  0x2d   :  { %193 = vmatprep.subr.bf16.mxu0 %v192_v10  ;;  %v146_v22 = vld [vmem:[%s334_s3] sm:$0x3] }
  0x2e   :  { %v62_v20 = vrot.slane %v57_v18, %v61_v17  ;;  %v66_v21 = vrot.slane %v57_v18, %v65_v19  ;;  %v151_v26 = vrot.slane %v146_v22, %v61_v17  ;;  %v155_v28 = vrot.slane %v146_v22, %v65_v19 }
  0x30   :  { %195 = vmatpush1.bf16.msra.mxu0 %v194_v13 }
  0x33   :  { %185 = vmatmul.mubr.msk.f32.vlgmr.msra.gmra.mrb[0].mxu0 %vm69_vm0, %v48_v14 }
 0x106   :  { %v139_v23 = vpop.f32.mrb[0].mxu0 }
 0x107   :  { %v140_v24 = vadd.f32 %v139_v23, %v62_v20  ;;  %v141_v25 = vpop.f32.mrb[1].mxu0 }
 0x108   :  { %v142_v27 = vadd.f32 %v141_v25, %v66_v21 }
 0x109   :  { %v144_v29 = vmax.f32 %v140_v24, 0.0 }
 0x10a   :  { %v145_v30 = vmax.f32 %v142_v27, 0.0 }
 0x10b   :  { %v158_v31 = vmul.f32 %v151_v26, %v144_v29 }
 0x10c   :  { %v159_v32 = vmul.f32 %v155_v28, %v145_v30 }
 0x10e   :  { %v160_v33 = vadd.f32 %v159_v32, %v158_v31 }
 0x110   :  { %161 = vadd.xlane.f32.xlu0 %v160_v33 }
 0x19d   :  { %v162_v35 = vpop.xlane.xlu0 %161 }
 0x19e   :  { %v170_v36 = vadd.f32 %v186_v34, %v162_v35 }
 0x1a0   :  { %v187_v37 = vmul.f32 -1.442695, %v170_v36 }
 0x1a2   :  { %201 = vpow2.f32 %v187_v37 }
 0x1ac   :  { %v202_v38 = vpop.eup %201 }
 0x1ad   :  { %v174_v39 = vadd.f32 1.0, %v202_v38 }
 0x1af   :  { %203 = vrcp.f32 %v174_v39 }
 0x1b9   :  { %v204_v40 = vpop.eup %203 }
 0x1ba   :  { %178 = vst.msk [vmem:[%s336_s5] sm:$0xff] %vm177_vm1, %v204_v40 }
 0x1bb   :  { %183 = vsyncpa [#allocation4], 1 }
 0x1bc   :  { %184 = vsyncpa [#allocation6], 1 }

</bundles_post_ra>
